<compile_context>
chip_gen: v5e
topology: v5e:2x2
jax: 0.10.0
libtpu: 0.0.40
codegen_flags: <defaults>
</compile_context>

<pallas_src>
import functools

import numpy as np
import jax
import jax.numpy as jnp
from jax import lax
from jax.experimental import pallas as pl
from jax.experimental.pallas import tpu as pltpu


# ----------------------------- shared SE core --------------------------------

def _se_from_partition(x, ct):
    """Structure-entropy scalar ([1,1]) from logits x [N,D] and C^T [K,N]."""
    n = x.shape[0]

    # MXU push 1: S = X X^T via a shared contracting dim (no explicit XLU
    # transpose of x materialised before the MXU push).
    s_full = lax.dot_general(
        x, x, dimension_numbers=(((1,), (1,)), ((), ())),
        preferred_element_type=jnp.float32)                             # [N, N]
    a_full = jax.nn.sigmoid(s_full)                                     # [N, N]

    # diag(A) as a lane-dense row [1, N]: eye mask + sublane reduce.  Using
    # A's own diagonal keeps the removal bit-consistent with a_full.
    ri = lax.broadcasted_iota(jnp.int32, (n, n), 0)
    ci = lax.broadcasted_iota(jnp.int32, (n, n), 1)
    d_row = jnp.sum(jnp.where(ri == ci, a_full, 0.0),
                    axis=0, keepdims=True)                              # [1, N]

    # deno = 1 / sum(A - diag(A)); the lone divide goes to the EUP slot.
    sum_a = jnp.sum(jnp.sum(a_full, axis=1, keepdims=True),
                    axis=0, keepdims=True)                              # [1, 1]
    sum_d = jnp.sum(d_row, axis=1, keepdims=True)                       # [1, 1]
    deno = pl.reciprocal(sum_a - sum_d, approx=True)                    # [1, 1]

    # MXU push 2: C^T A (A symmetric, so this equals (A C)^T).  Diagonal
    # removal is folded on the VPU: g = C^T (A - diag(A)).
    ct_af = jnp.dot(ct, a_full, preferred_element_type=jnp.float32)     # [K, N]
    g = ct_af - ct * d_row                                              # [K, N]

    # enco[k]      = sum_n (A_nodiag C)[n,k]       (column sums)
    # rate_diag[k] = (C^T A_nodiag C)[k,k]          (only the diagonal is used)
    enco = jnp.sum(g, axis=1, keepdims=True)                            # [K, 1]
    rate_diag = jnp.sum(ct * g, axis=1, keepdims=True)                  # [K, 1]

    # trace((enco_p - Rate_p) * log2(enco_p + 1e-20))
    se_terms = (enco - rate_diag) * deno * jnp.log2(enco * deno + 1e-20)
    return jnp.sum(se_terms, axis=0, keepdims=True)                     # [1, 1]


# --------------------------------- kernels -----------------------------------

def se_soft_kernel(anchors, logits_ref, label_ref, out_ref):
    # logits [N,D], label [1,N] -> out [1,1]; anchors are baked-in floats.
    x = logits_ref[...].astype(jnp.float32)
    lab = label_ref[...].astype(jnp.float32)                            # [1, N]
    k, n = len(anchors), lab.shape[1]

    # Lane-dense soft partition C^T [K, N] built from scalar immediates.
    kidx = lax.broadcasted_iota(jnp.int32, (k, n), 0)
    dist = jnp.zeros((k, n), jnp.float32)
    for j, a in enumerate(anchors):                      # unrolled, K is tiny
        dist = jnp.where(kidx == j, jnp.abs(lab - a), dist)
    ct = jax.nn.softmax(-dist, axis=0)                   # softmax over classes
    out_ref[...] = _se_from_partition(x, ct)


def se_hard_kernel(bin_edges, logits_ref, label_ref, out_ref):
    # logits [N,D], label [1,N] -> out [1,1]; bin edges are baked-in floats.
    x = logits_ref[...].astype(jnp.float32)
    lab = label_ref[...].astype(jnp.float32)                            # [1, N]
    k, n = len(bin_edges) - 1, lab.shape[1]

    # One-hot^T [K, N] from K interval tests against scalar immediates.
    # Labels outside [bins[0], bins[-1]) yield an all-zero column, matching
    # jax.nn.one_hot on out-of-range indices (np.digitize - 1 semantics).
    kidx = lax.broadcasted_iota(jnp.int32, (k, n), 0)
    ct = jnp.zeros((k, n), jnp.float32)
    for j in range(k):                                   # unrolled, K is tiny
        in_bin = jnp.logical_and(lab >= bin_edges[j], lab < bin_edges[j + 1])
        ct = jnp.where(kidx == j, in_bin.astype(jnp.float32), ct)
    out_ref[...] = _se_from_partition(x, ct)


# --------------------------------- wrapper ------------------------------------

class SELossRES:
    """JAX/Pallas port of the PyTorch SELoss_RES module."""

    def __init__(self, bins, soft_se):
        bins = np.asarray(bins, np.float32)
        self.soft_se = bool(soft_se)
        edges = tuple(float(b) for b in bins)
        anchors = tuple(float(a) for a in ((bins[1:] + bins[:-1]) * 0.5))
        if self.soft_se:
            self._kernel = functools.partial(se_soft_kernel, anchors)
        else:
            self._kernel = functools.partial(se_hard_kernel, edges)
        # jit once: the label reshape + pallas dispatch compile together.
        self._fwd = jax.jit(self._forward)

    def _forward(self, logits, label):
        n = logits.shape[0]
        # Native-dtype logits go straight to the kernel (cast happens on-chip).
        label_row = jnp.asarray(label)[0].reshape(1, n).astype(jnp.float32)
        vmem = pl.BlockSpec(memory_space=pltpu.MemorySpace.VMEM)
        se = pl.pallas_call(
            self._kernel,
            out_shape=jax.ShapeDtypeStruct((1, 1), jnp.float32),
            in_specs=[vmem, vmem],
            out_specs=vmem,
        )(logits, label_row)
        return se[0, 0]

    def __call__(self, logits, label):
        return self._fwd(logits, label)


# ----------------------------- pure-JAX reference ------------------------------

def se_loss_ref(logits, label, bins, soft_se):
    adj = jax.nn.sigmoid(logits @ logits.T)
    lab = label[0]
    if soft_se:
        anchor = (bins[1:] + bins[:-1]) / 2.0
        dist = jnp.abs(lab[:, None] - anchor[None, :])
        C = jax.nn.softmax(-dist, axis=1)
    else:
        idx = jnp.digitize(lab, bins) - 1
        C = jax.nn.one_hot(idx, int(bins.shape[0]) - 1, dtype=adj.dtype)
    adj = adj - jnp.diag(jnp.diag(adj))
    deno = 1.0 / jnp.sum(adj)
    AC = adj @ C
    rate_p = C.T @ AC * deno
    enco_p = jnp.ones_like(C.T) @ AC * deno
    rate_p = enco_p - rate_p
    encolen = jnp.log2(enco_p + 1e-20)
    return jnp.trace(rate_p * encolen)


# ----------------------------------- main --------------------------------------

if __name__ == "__main__":
    key = jax.random.PRNGKey(0)
    k1, k2 = jax.random.split(key)

    N, D = 16, 32
    bins = np.linspace(0.0, 1.0, 5)        # 4 histogram classes (deterministic)

    logits = jax.random.normal(k1, (N, D), dtype=jnp.float32)
    label = jax.random.uniform(k2, (1, N), dtype=jnp.float32)   # label[0] used

    bins_j = jnp.asarray(bins, jnp.float32)
    for soft in (True, False):
        mod = SELossRES(bins, soft_se=soft)
        out = jax.block_until_ready(mod(logits, label))
        ref = jax.block_until_ready(se_loss_ref(logits, label, bins_j, soft))
        assert np.allclose(np.asarray(out), np.asarray(ref),
                           rtol=1e-3, atol=1e-3), (soft, out, ref)

    print("KERNEL_OK")
</pallas_src>

<mosaic_0001>
module attributes {stable_mosaic.version = 11 : i64} {
  func.func @se_soft_kernel(%arg0: memref<16x32xf32, #tpu.memory_space<vmem>>, %arg1: memref<1x16xf32, #tpu.memory_space<vmem>>, %arg2: memref<1x1xf32, #tpu.memory_space<vmem>>) attributes {dimension_semantics = [], scalar_prefetch = 0 : i64, scratch_operands = 0 : i64, tpu.core_type = #tpu.core_type<tc>} {
    %c0 = arith.constant 0 : index
    %c0_0 = arith.constant 0 : index
    %0 = vector.load %arg0[%c0, %c0_0] : memref<16x32xf32, #tpu.memory_space<vmem>>, vector<16x32xf32>
    %c0_1 = arith.constant 0 : index
    %c0_2 = arith.constant 0 : index
    %1 = vector.load %arg1[%c0_1, %c0_2] : memref<1x16xf32, #tpu.memory_space<vmem>>, vector<1x16xf32>
    %2 = tpu.iota {dimensions = array<i32: 0>} : vector<4x16xi32>
    %cst = arith.constant 0.000000e+00 : f32
    %3 = vector.broadcast %cst : f32 to vector<4x16xf32>
    %c0_i32 = arith.constant 0 : i32
    %4 = vector.broadcast %c0_i32 : i32 to vector<4x16xi32>
    %5 = arith.cmpi eq, %2, %4 : vector<4x16xi32>
    %cst_3 = arith.constant 1.250000e-01 : f32
    %6 = vector.broadcast %cst_3 : f32 to vector<1x16xf32>
    %7 = arith.subf %1, %6 : vector<1x16xf32>
    %8 = math.absf %7 : vector<1x16xf32>
    %9 = vector.shape_cast %8 : vector<1x16xf32> to vector<1x16xf32>
    %10 = vector.broadcast %9 : vector<1x16xf32> to vector<4x16xf32>
    %11 = arith.select %5, %10, %3 : vector<4x16xi1>, vector<4x16xf32>
    %c1_i32 = arith.constant 1 : i32
    %12 = vector.broadcast %c1_i32 : i32 to vector<4x16xi32>
    %13 = arith.cmpi eq, %2, %12 : vector<4x16xi32>
    %cst_4 = arith.constant 3.750000e-01 : f32
    %14 = vector.broadcast %cst_4 : f32 to vector<1x16xf32>
    %15 = arith.subf %1, %14 : vector<1x16xf32>
    %16 = math.absf %15 : vector<1x16xf32>
    %17 = vector.shape_cast %16 : vector<1x16xf32> to vector<1x16xf32>
    %18 = vector.broadcast %17 : vector<1x16xf32> to vector<4x16xf32>
    %19 = arith.select %13, %18, %11 : vector<4x16xi1>, vector<4x16xf32>
    %c2_i32 = arith.constant 2 : i32
    %20 = vector.broadcast %c2_i32 : i32 to vector<4x16xi32>
    %21 = arith.cmpi eq, %2, %20 : vector<4x16xi32>
    %cst_5 = arith.constant 6.250000e-01 : f32
    %22 = vector.broadcast %cst_5 : f32 to vector<1x16xf32>
    %23 = arith.subf %1, %22 : vector<1x16xf32>
    %24 = math.absf %23 : vector<1x16xf32>
    %25 = vector.shape_cast %24 : vector<1x16xf32> to vector<1x16xf32>
    %26 = vector.broadcast %25 : vector<1x16xf32> to vector<4x16xf32>
    %27 = arith.select %21, %26, %19 : vector<4x16xi1>, vector<4x16xf32>
    %c3_i32 = arith.constant 3 : i32
    %28 = vector.broadcast %c3_i32 : i32 to vector<4x16xi32>
    %29 = arith.cmpi eq, %2, %28 : vector<4x16xi32>
    %cst_6 = arith.constant 8.750000e-01 : f32
    %30 = vector.broadcast %cst_6 : f32 to vector<1x16xf32>
    %31 = arith.subf %1, %30 : vector<1x16xf32>
    %32 = math.absf %31 : vector<1x16xf32>
    %33 = vector.shape_cast %32 : vector<1x16xf32> to vector<1x16xf32>
    %34 = vector.broadcast %33 : vector<1x16xf32> to vector<4x16xf32>
    %35 = arith.select %29, %34, %27 : vector<4x16xi1>, vector<4x16xf32>
    %cst_7 = arith.constant 0.000000e+00 : f32
    %36 = vector.broadcast %cst_7 : f32 to vector<4x16xf32>
    %37 = arith.subf %36, %35 : vector<4x16xf32>
    %cst_8 = arith.constant dense<0xFF800000> : vector<16xf32>
    %38 = vector.multi_reduction <maximumf>, %37, %cst_8 [0] : vector<4x16xf32> to vector<16xf32>
    %cst_9 = arith.constant 0xFF800000 : f32
    %39 = vector.broadcast %cst_9 : f32 to vector<16xf32>
    %40 = arith.maximumf %39, %38 : vector<16xf32>
    %41 = vector.shape_cast %40 : vector<16xf32> to vector<1x16xf32>
    %42 = vector.broadcast %41 : vector<1x16xf32> to vector<4x16xf32>
    %43 = arith.subf %37, %42 : vector<4x16xf32>
    %44 = math.exp %43 : vector<4x16xf32>
    %cst_10 = arith.constant dense<0.000000e+00> : vector<16xf32>
    %45 = vector.multi_reduction <add>, %44, %cst_10 [0] : vector<4x16xf32> to vector<16xf32>
    %46 = vector.shape_cast %45 : vector<16xf32> to vector<1x16xf32>
    %47 = vector.broadcast %46 : vector<1x16xf32> to vector<4x16xf32>
    %48 = arith.divf %44, %47 : vector<4x16xf32>
    %cst_11 = arith.constant dense<0.000000e+00> : vector<16x16xf32>
    %49 = tpu.matmul %0, %0, %cst_11 {dimension_numbers = #tpu.dot_dimension_numbers<[1], [1], [0], [0], [0, 0, 1, 0], [], []>} : vector<16x32xf32>, vector<16x32xf32>, vector<16x16xf32> -> vector<16x16xf32>
    %50 = arith.negf %49 : vector<16x16xf32>
    %51 = math.exp %50 : vector<16x16xf32>
    %cst_12 = arith.constant 1.000000e+00 : f32
    %52 = vector.broadcast %cst_12 : f32 to vector<16x16xf32>
    %53 = arith.addf %52, %51 : vector<16x16xf32>
    %54 = arith.divf %52, %53 : vector<16x16xf32>
    %55 = tpu.iota {dimensions = array<i32: 0>} : vector<16x16xi32>
    %56 = tpu.iota {dimensions = array<i32: 1>} : vector<16x16xi32>
    %57 = arith.cmpi eq, %55, %56 : vector<16x16xi32>
    %cst_13 = arith.constant 0.000000e+00 : f32
    %58 = vector.broadcast %cst_13 : f32 to vector<16x16xf32>
    %59 = arith.select %57, %54, %58 : vector<16x16xi1>, vector<16x16xf32>
    %cst_14 = arith.constant dense<0.000000e+00> : vector<16xf32>
    %60 = vector.multi_reduction <add>, %59, %cst_14 [0] : vector<16x16xf32> to vector<16xf32>
    %61 = vector.shape_cast %60 : vector<16xf32> to vector<1x16xf32>
    %cst_15 = arith.constant dense<0.000000e+00> : vector<16xf32>
    %62 = vector.multi_reduction <add>, %54, %cst_15 [1] : vector<16x16xf32> to vector<16xf32>
    %63 = vector.shape_cast %62 : vector<16xf32> to vector<16x1xf32>
    %cst_16 = arith.constant dense<0.000000e+00> : vector<1xf32>
    %64 = vector.multi_reduction <add>, %63, %cst_16 [0] : vector<16x1xf32> to vector<1xf32>
    %65 = vector.shape_cast %64 : vector<1xf32> to vector<1x1xf32>
    %cst_17 = arith.constant dense<0.000000e+00> : vector<1xf32>
    %66 = vector.multi_reduction <add>, %61, %cst_17 [1] : vector<1x16xf32> to vector<1xf32>
    %67 = vector.shape_cast %66 : vector<1xf32> to vector<1x1xf32>
    %68 = arith.subf %65, %67 : vector<1x1xf32>
    %69 = tpu.reciprocal %68 {approx = true} : vector<1x1xf32> -> vector<1x1xf32>
    %cst_18 = arith.constant dense<0.000000e+00> : vector<4x16xf32>
    %70 = tpu.matmul %48, %54, %cst_18 {dimension_numbers = #tpu.dot_dimension_numbers<[1], [0], [0], [1], [0, 0, 1, 1], [], []>} : vector<4x16xf32>, vector<16x16xf32>, vector<4x16xf32> -> vector<4x16xf32>
    %71 = vector.broadcast %61 : vector<1x16xf32> to vector<4x16xf32>
    %72 = arith.mulf %48, %71 : vector<4x16xf32>
    %73 = arith.subf %70, %72 : vector<4x16xf32>
    %cst_19 = arith.constant dense<0.000000e+00> : vector<4xf32>
    %74 = vector.multi_reduction <add>, %73, %cst_19 [1] : vector<4x16xf32> to vector<4xf32>
    %75 = vector.shape_cast %74 : vector<4xf32> to vector<4x1xf32>
    %76 = arith.mulf %48, %73 : vector<4x16xf32>
    %cst_20 = arith.constant dense<0.000000e+00> : vector<4xf32>
    %77 = vector.multi_reduction <add>, %76, %cst_20 [1] : vector<4x16xf32> to vector<4xf32>
    %78 = vector.shape_cast %77 : vector<4xf32> to vector<4x1xf32>
    %79 = arith.subf %75, %78 : vector<4x1xf32>
    %80 = vector.broadcast %69 : vector<1x1xf32> to vector<4x1xf32>
    %81 = arith.mulf %79, %80 : vector<4x1xf32>
    %82 = vector.broadcast %69 : vector<1x1xf32> to vector<4x1xf32>
    %83 = arith.mulf %75, %82 : vector<4x1xf32>
    %cst_21 = arith.constant 9.99999968E-21 : f32
    %84 = vector.broadcast %cst_21 : f32 to vector<4x1xf32>
    %85 = arith.addf %83, %84 : vector<4x1xf32>
    %86 = math.log %85 : vector<4x1xf32>
    %cst_22 = arith.constant 2.000000e+00 : f32
    %87 = math.log %cst_22 : f32
    %88 = vector.broadcast %87 : f32 to vector<4x1xf32>
    %89 = arith.divf %86, %88 : vector<4x1xf32>
    %90 = arith.mulf %81, %89 : vector<4x1xf32>
    %cst_23 = arith.constant dense<0.000000e+00> : vector<1xf32>
    %91 = vector.multi_reduction <add>, %90, %cst_23 [0] : vector<4x1xf32> to vector<1xf32>
    %92 = vector.shape_cast %91 : vector<1xf32> to vector<1x1xf32>
    %c0_24 = arith.constant 0 : index
    %c0_25 = arith.constant 0 : index
    %93 = vector.load %arg2[%c0_24, %c0_25] : memref<1x1xf32, #tpu.memory_space<vmem>>, vector<1x1xf32>
    tpu.vector_store %arg2[%c0_24, %c0_25], %92 {strides = array<i32>} : memref<1x1xf32, #tpu.memory_space<vmem>>, vector<1x1xf32>,
    return
  }
}

</mosaic_0001>

<bundles_post_ra>
// kernel: _forward.1
= control target key start
LH: loop header
LB: loop body
LE: loop exit
PB: predicated region body
PF: predicated region fallthrough
CT: control target
= control target key end

     0   :  { %7 = vsyncpa [#allocation3], 0  ;;  %s462_s0 = inlined_call_operand.hbm [shape: f32[16,32], index: 0, kind: input, shape index: {}]   ;;  %s463_s1 = inlined_call_operand.hbm [shape: f32[1,16], index: 1, kind: input, shape index: {}]   ;;  %s464_s2 = inlined_call_operand.hbm [shape: f32[1,1], index: 2, kind: output, shape index: {}]  }
   0x1   :  { %8 = vsyncpa [#allocation6], 0 }
   0x2   :  { %9 = vsyncpa [#allocation4], 0  ;;  %s14_s11 = sshll.u32 %s462_s0, 4  ;;  %s402_s12 = smov [#allocation2]   ;;  %s15_s11 = int_to_ptr.hbm [resolvable:$true] %s14_s11 }
   0x3   :  { %s16_s13 = sshll.u32 %s402_s12, 4  ;;  %s28_s16 = sshll.u32 %s463_s1, 4  ;;  %s17_s13 = int_to_ptr.vmem [resolvable:$true] %s16_s13  ;;  %s29_s16 = int_to_ptr.hbm [resolvable:$true] %s28_s16 }
   0x4   :  { %s403_s17 = smov 128   ;;  %s404_s18 = smov 8  }
   0x5   :  { %22 = dma.hbm_to_vmem [thread:$0]  %s15_s11, 256, %s17_s13, [#allocation3], %s403_s17, %s403_s17, %s404_s18  }
   0x6   :  { %s405_s19 = smov [#allocation5]  }
   0x7   :  { %s30_s20 = sshll.u32 %s405_s19, 4  ;;  %s31_s20 = int_to_ptr.vmem [resolvable:$true] %s30_s20 }
   0x8   :  { %33 = dma.hbm_to_vmem [thread:$0]  %s29_s16, 16, %s31_s20, [#allocation6]  }
   0x9   :  { %396 = dma.done.wait [#allocation3], 256  }
   0xa   :  { %397 = vsyncadd [#allocation3], 4294967040 }
   0xb   :  { %398 = dma.done.wait [#allocation6], 16  }
   0xc   :  { %399 = vsyncadd [#allocation6], 4294967280  ;;  %vm109_vm0 = vcmask 261120   ;;  %v43_v0 = vld [vmem:[#allocation2 + $0x8] sm:$0xff]  ;;  %v42_v1 = vld [vmem:[#allocation2] sm:$0xff]  ;;  %v45_v4 = vlaneseq  ;;  %vm76_vm5 = vcmask 125952  }
   0xd   :  { %291 = vmatpush.xpose.msk.msra.mxu0 %vm109_vm0, %v43_v0  ;;  %298 = vmatpush.xpose.msk.msra.mxu2 %vm109_vm0, %v43_v0  ;;  %v44_v2 = vld [vmem:[#allocation5] sm:$0x1]  ;;  %vm184_vm12 = vcmask 130048   ;;  %s407_s0 = smov [#allocation7]   ;;  %s276_s23 = sshll.u32 %s464_s2, 4  ;;  %s277_s23 = int_to_ptr.hbm [resolvable:$true] %s276_s23 }
   0xe   :  { %v287_v3 = vadd.f32 -0.125, %v44_v2  ;;  %v288_v5 = vadd.f32 -0.375, %v44_v2  ;;  %v289_v7 = vadd.f32 -0.625, %v44_v2  ;;  %v430_v8 = vshrl.u32 %v45_v4, 7  ;;  %s274_s1 = sshll.u32 %s407_s0, 4  ;;  %s275_s1 = int_to_ptr.vmem [resolvable:$true] %s274_s1 }
   0xf   :  { %v290_v10 = vadd.f32 -0.875, %v44_v2 }
  0x10   :  { %v49_v6 = vand.u32 2147483647, %v287_v3  ;;  %v56_v9 = vand.u32 2147483647, %v288_v5  ;;  %v63_v12 = vand.u32 2147483647, %v289_v7 }
  0x11   :  { %292 = vmatpush.xpose.msk.msra.mxu0 %vm109_vm0, %v42_v1  ;;  %299 = vmatpush.xpose.msk.msra.mxu2 %vm109_vm0, %v42_v1  ;;  %vm47_vm1 = vcmp.eq.s32.totalorder %v430_v8, 0  ;;  %v70_v14 = vand.u32 2147483647, %v290_v10  ;;  %vm54_vm2 = vcmp.eq.s32.totalorder %v430_v8, 1  ;;  %vm61_vm3 = vcmp.eq.s32.totalorder %v430_v8, 2 }
  0x12   :  { %v51_v11 = vperm.slane %v49_v6, 0  ;;  %v58_v13 = vperm.slane %v56_v9, 0  ;;  %v65_v16 = vperm.slane %v63_v12, 0  ;;  %vm68_vm4 = vcmp.eq.s32.totalorder %v430_v8, 3 }
  0x13   :  { %v72_v18 = vperm.slane %v70_v14, 0  ;;  %v177_v2 = vadd.s32 8, %v430_v8 }
  0x14   :  { %293 = vmatmul.msk.f32.vlgmr.msra.gmra.mxu0 %vm109_vm0, %v42_v1  ;;  %294 = vmatmul.msk.f32.vlgmr.msra.gmra.mxu2 %vm109_vm0, %v43_v0  ;;  %v53_v15 = vsel %vm47_vm1, %v51_v11, 0.0  ;;  %v179_v1 = vand.u32 127, %v45_v4 }
  0x15   :  { %v60_v17 = vsel %vm54_vm2, %v58_v13, %v53_v15 }
  0x16   :  { %v67_v19 = vsel %vm61_vm3, %v65_v16, %v60_v17  ;;  %vm180_vm0 = vcmp.eq.s32.totalorder %v430_v8, %v179_v1  ;;  %vm181_vm3 = vcmp.eq.s32.totalorder %v177_v2, %v179_v1 }
  0x17   :  { %v74_v20 = vsel %vm68_vm4, %v72_v18, %v67_v19 }
  0x18   :  { %v75_v21 = vsub.f32 0.0, %v74_v20 }
  0x1a   :  { %v77_v22 = vsel %vm76_vm5, %v75_v21, -inf }
  0x1b   :  { %v78_v23 = vrot.slane %v77_v22, 4 }
  0x1d   :  { %v79_v24 = vmax.f32 %v77_v22, %v78_v23 }
  0x1f   :  { %v80_v25 = vrot.slane %v79_v24, 2 }
  0x21   :  { %v81_v26 = vmax.f32 %v79_v24, %v80_v25 }
  0x23   :  { %v82_v27 = vrot.slane %v81_v26, 1 }
  0x25   :  { %v83_v28 = vmax.f32 %v81_v26, %v82_v27 }
  0x27   :  { %v84_v29 = vsub.f32 %v75_v21, %v83_v28 }
  0x29   :  { %v85_v30 = vmul.f32 1.442695, %v84_v29 }
  0x2b   :  { %306 = vpow2.f32 %v85_v30 }
  0x31   :  { %v437_v31 = vpop.eup %306 }
  0x32   :  { %v87_v32 = vsel %vm76_vm5, %v437_v31, 0.0 }
  0x33   :  { %v88_v33 = vrot.slane %v87_v32, 4 }
  0x35   :  { %v89_v34 = vadd.f32 %v88_v33, %v87_v32 }
  0x37   :  { %v90_v35 = vrot.slane %v89_v34, 2 }
  0x39   :  { %v91_v36 = vadd.f32 %v90_v35, %v89_v34 }
  0x3b   :  { %v92_v37 = vrot.slane %v91_v36, 1 }
  0x3d   :  { %v93_v38 = vadd.f32 %v92_v37, %v91_v36 }
  0x3f   :  { %308 = vrcp.f32 %v93_v38  ;;  %vm99_vm6 = vweird.f32 %v93_v38  ;;  %v105_v55 = vand.u32 2147483648, %v93_v38  ;;  %v103_v60 = vand.u32 2147483647, %v93_v38 }
  0x41   :  { %v106_v6 = vor.u32 1.1754944e-38, %v105_v55  ;;  %vm104_vm14 = vcmp.eq.f32.partialorder %v103_v60, 8.507059e+37 }
  0x45   :  { %v309_v43 = vpop.eup %308 }
  0x46   :  { %v95_v46 = vmul.f32 %v309_v43, %v93_v38  ;;  %vm100_vm7 = vweird.f32 %v309_v43 }
  0x47   :  { %vm441_vm10 = vmor %vm99_vm6, %vm100_vm7  ;;  %vm259_vm6 = vcmask 1043456   ;;  %vm267_vm7 = vcmask 0  }
  0x48   :  { %v96_v49 = vsub.f32 1.0, %v95_v46  ;;  %v406_v46 = vmov 0.6931472  }
  0x4a   :  { %v97_v52 = vmul.f32 %v309_v43, %v96_v49 }
  0x4c   :  { %v98_v59 = vadd.f32 %v309_v43, %v97_v52 }
  0x4e   :  { %v102_v10 = vsel %vm441_vm10, %v309_v43, %v98_v59 }
  0x4f   :  { %v107_v14 = vsel %vm104_vm14, %v106_v6, %v102_v10 }
  0x50   :  { %v108_v19 = vmul.f32 %v437_v31, %v107_v14 }
  0x91   :  { %v133_v39 = vpop.f32.mrf.mxu0 }
  0x92   :  { %v295_v40 = vmul.f32 -1.442695, %v133_v39 }
  0x94   :  { %310 = vpow2.f32 %v295_v40 }
  0x97   :  { %v136_v41 = vpop.f32.mrf.mxu2 }
  0x98   :  { %v296_v42 = vmul.f32 -1.442695, %v136_v41 }
  0x9a   :  { %v311_v44 = vpop.eup %310  ;;  %312 = vpow2.f32 %v296_v42 }
  0x9b   :  { %v145_v45 = vadd.f32 1.0, %v311_v44 }
  0x9d   :  { %314 = vrcp.f32 %v145_v45  ;;  %v158_v54 = vand.u32 2147483648, %v145_v45  ;;  %vm152_vm8 = vweird.f32 %v145_v45  ;;  %v156_v57 = vand.u32 2147483647, %v145_v45 }
  0x9f   :  { %v159_v0 = vor.u32 1.1754944e-38, %v158_v54  ;;  %vm157_vm13 = vcmp.eq.f32.partialorder %v156_v57, 8.507059e+37 }
  0xa0   :  { %v313_v47 = vpop.eup %312 }
  0xa1   :  { %v146_v48 = vadd.f32 1.0, %v313_v47 }
  0xa3   :  { %v315_v50 = vpop.eup %314  ;;  %316 = vrcp.f32 %v146_v48  ;;  %v173_v9 = vand.u32 2147483648, %v146_v48  ;;  %v171_v13 = vand.u32 2147483647, %v146_v48  ;;  %vm167_vm1 = vweird.f32 %v146_v48 }
  0xa4   :  { %v148_v51 = vmul.f32 %v315_v50, %v145_v45  ;;  %vm153_vm9 = vweird.f32 %v315_v50  ;;  %318 = vrcp.f32 %v406_v46 }
  0xa5   :  { %vm154_vm11 = vmor %vm152_vm8, %vm153_vm9  ;;  %v174_v15 = vor.u32 1.1754944e-38, %v173_v9  ;;  %vm172_vm4 = vcmp.eq.f32.partialorder %v171_v13, 8.507059e+37 }
  0xa6   :  { %v149_v53 = vsub.f32 1.0, %v148_v51 }
  0xa8   :  { %v150_v56 = vmul.f32 %v315_v50, %v149_v53 }
  0xa9   :  { %v317_v58 = vpop.eup %316 }
  0xaa   :  { %v151_v61 = vadd.f32 %v315_v50, %v150_v56  ;;  %v163_v62 = vmul.f32 %v317_v58, %v146_v48  ;;  %vm168_vm15 = vweird.f32 %v317_v58  ;;  %v319_v49 = vpop.eup %318 }
  0xab   :  { %vm169_vm2 = vmor %vm167_vm1, %vm168_vm15 }
  0xac   :  { %v155_v3 = vsel %vm154_vm11, %v315_v50, %v151_v61  ;;  %v164_v5 = vsub.f32 1.0, %v163_v62  ;;  %v251_v50 = vmul.f32 0.6931472, %v319_v49 }
  0xad   :  { %v160_v7 = vsel %vm157_vm13, %v159_v0, %v155_v3 }
  0xae   :  { %v194_v11 = vsel %vm184_vm12, %v160_v7, 0.0  ;;  %v165_v12 = vmul.f32 %v317_v58, %v164_v5  ;;  %v182_v16 = vsel %vm180_vm0, %v160_v7, 0.0  ;;  %v252_v51 = vsub.f32 1.0, %v251_v50 }
  0xaf   :  { %195 = vadd.xlane.f32.xlu0 %v194_v11  ;;  %v185_v21 = vsel %vm184_vm12, %v182_v16, 0.0 }
  0xb0   :  { %v166_v4 = vadd.f32 %v317_v58, %v165_v12  ;;  %v253_v55 = vmul.f32 %v319_v49, %v252_v51 }
  0xb2   :  { %v170_v17 = vsel %vm169_vm2, %v317_v58, %v166_v4  ;;  %v254_v57 = vadd.f32 %v319_v49, %v253_v55 }
  0xb3   :  { %v175_v18 = vsel %vm172_vm4, %v174_v15, %v170_v17 }
  0xb4   :  { %v183_v20 = vsel %vm181_vm3, %v175_v18, 0.0  ;;  %229 = vmatpush.msra.mxu1 %v175_v18  ;;  %v197_v23 = vsel %vm184_vm12, %v175_v18, 0.0 }
  0xb5   :  { %v186_v22 = vsel %vm184_vm12, %v183_v20, 0.0 }
  0xb6   :  { %v187_v8 = vadd.f32 %v186_v22, %v185_v21  ;;  %230 = vmatpush.msra.mxu1 %v160_v7 }
  0xb7   :  { %297 = vmatmul.msk.f32.vlgmr.msra.gmra.mxu1 %vm184_vm12, %v108_v19  ;;  %198 = vadd.xlane.f32.xlu0 %v197_v23 }
  0xb8   :  { %v188_v24 = vrot.slane %v187_v8, 4 }
  0xba   :  { %v189_v25 = vadd.f32 %v188_v24, %v187_v8 }
  0xbc   :  { %v190_v26 = vrot.slane %v189_v25, 2 }
  0xbe   :  { %v191_v27 = vadd.f32 %v190_v26, %v189_v25 }
  0xc0   :  { %v192_v28 = vrot.slane %v191_v27, 1 }
  0xc2   :  { %v193_v29 = vadd.f32 %v192_v28, %v191_v27 }
  0xc4   :  { %v207_v30 = vsel %vm184_vm12, %v193_v29, 0.0  ;;  %v235_v31 = vmul.f32 %v193_v29, %v108_v19 }
  0xc5   :  { %208 = vadd.xlane.f32.xlu1 %v207_v30 }
 0x122   :  { %v196_v37 = vpop.xlane.xlu0 %195 }
 0x12a   :  { %v199_v38 = vpop.xlane.xlu0 %198 }
 0x12b   :  { %v200_v39 = vadd.f32 %v199_v38, %v196_v37 }
 0x12d   :  { %v201_v40 = vrot.slane %v200_v39, 4 }
 0x12f   :  { %v202_v41 = vadd.f32 %v201_v40, %v200_v39 }
 0x131   :  { %v203_v42 = vrot.slane %v202_v41, 2 }
 0x133   :  { %v204_v43 = vadd.f32 %v203_v42, %v202_v41 }
 0x134   :  { %v232_v32 = vpop.f32.mrf.mxu1 }
 0x135   :  { %v236_v33 = vsub.f32 %v232_v32, %v235_v31  ;;  %v205_v44 = vrot.slane %v204_v43, 1 }
 0x137   :  { %v237_v34 = vsel %vm76_vm5, %v236_v33, 0.0  ;;  %v240_v35 = vmul.f32 %v236_v33, %v108_v19  ;;  %v206_v45 = vadd.f32 %v205_v44, %v204_v43 }
 0x138   :  { %238 = vadd.xlane.f32.xlu1 %v237_v34  ;;  %v209_v47 = vpop.xlane.xlu1 %208 }
 0x139   :  { %v241_v36 = vsel %vm76_vm5, %v240_v35, 0.0  ;;  %v210_v48 = vsub.f32 %v206_v45, %v209_v47  ;;  %vm255_vm5 = vweird.f32 %v319_v49 }
 0x13a   :  { %242 = vadd.xlane.f32.xlu2 %v241_v36  ;;  %v256_v61 = vsel %vm255_vm5, %v319_v49, %v254_v57 }
 0x13b   :  { %320 = vrcp.f32 %v210_v48 }
 0x141   :  { %v321_v52 = vpop.eup %320 }
 0x1ab   :  { %v239_v53 = vpop.xlane.xlu1 %238 }
 0x1ac   :  { %v246_v54 = vmul.f32 %v321_v52, %v239_v53 }
 0x1ad   :  { %v243_v58 = vpop.xlane.xlu2 %242 }
 0x1ae   :  { %v247_v56 = vadd.f32 1e-20, %v246_v54  ;;  %v244_v59 = vsub.f32 %v239_v53, %v243_v58 }
 0x1b0   :  { %322 = vlog2.f32 %v247_v56  ;;  %v245_v0 = vmul.f32 %v321_v52, %v244_v59 }
 0x1b6   :  { %v323_v60 = vpop.eup %322 }
 0x1b7   :  { %v249_v62 = vmul.f32 0.6931472, %v323_v60 }
 0x1b9   :  { %v257_v63 = vmul.f32 %v256_v61, %v249_v62 }
 0x1bb   :  { %v258_v1 = vmul.f32 %v257_v63, %v245_v0 }
 0x1bd   :  { %v260_v2 = vsel %vm259_vm6, %v258_v1, 0.0 }
 0x1be   :  { %v261_v3 = vrot.slane %v260_v2, 4 }
 0x1c0   :  { %v262_v5 = vadd.f32 %v261_v3, %v260_v2 }
 0x1c2   :  { %v263_v6 = vrot.slane %v262_v5, 2 }
 0x1c4   :  { %v264_v7 = vadd.f32 %v263_v6, %v262_v5 }
 0x1c6   :  { %v265_v9 = vrot.slane %v264_v7, 1 }
 0x1c8   :  { %v266_v10 = vadd.f32 %v265_v9, %v264_v7 }
 0x1ca   :  { %268 = vst.msk [vmem:[#allocation7] sm:$0x1] %vm267_vm7, %v266_v10 }
 0x1cb   :  { %279 = dma.vmem_to_hbm [thread:$0]  %s275_s1, 16, %s277_s23, [#allocation4]  }
 0x1cc   :  { %400 = dma.done.wait [#allocation4], 16  }
 0x1cd   :  { %401 = vsyncadd [#allocation4], 4294967280 }
 0x1ce   :  { %284 = vsyncpa [#allocation3], 1 }
 0x1cf   :  { %285 = vsyncpa [#allocation6], 1 }
 0x1d0   :  { %286 = vsyncpa [#allocation4], 1 }

</bundles_post_ra>
